<compile_context>
chip_gen: v6e
topology: v6e:2x2x1
jax: 0.10.0
libtpu: 0.0.40
codegen_flags: <defaults>
</compile_context>

<pallas_src>
import jax
import jax.numpy as jnp
from jax.experimental import pallas as pl
from jax.experimental.pallas import tpu as pltpu

_LANES = 128
_MAX_BLOCK_ROWS = 2048  # 2048 x 128 x 4B = 1 MiB per f32 input tile


def _cdiv(a, b):
    return -(-a // b)


def _geometry(n, max_block_rows=_MAX_BLOCK_ROWS, lanes=_LANES):
    rows = _cdiv(n, lanes)
    if rows <= max_block_rows:
        block_rows = rows  # single block == full dim (any row count is legal)
    else:
        block_rows = max_block_rows  # multiple of 8
    n_blocks = _cdiv(rows, block_rows)
    splits = 2 if (n_blocks >= 2 and n_blocks % 2 == 0) else 1
    blocks_per_split = n_blocks // splits
    tail_rows = rows - (n_blocks - 1) * block_rows
    if tail_rows == block_rows:
        tail_rows = 0  # last block is full; no masking needed
    return {
        "lanes": lanes,
        "rows": rows,
        "padded_n": rows * lanes,
        "block_rows": block_rows,
        "n_blocks": n_blocks,
        "splits": splits,
        "blocks_per_split": blocks_per_split,
        "tail_rows": tail_rows,
    }


def _prepare_2d(arr, n, geom):
    """Flatten to (rows, 128) in the array's NATIVE dtype (upcast happens in-kernel)."""
    flat = jnp.ravel(arr)
    pad = geom["padded_n"] - n
    if pad:
        # Only hit when n is not a multiple of 128 (rare for conv feature maps);
        # both x and target are zero-padded so the pad contributes 0 to the sum.
        flat = jnp.pad(flat, (0, pad))
    return flat.reshape(geom["rows"], geom["lanes"])


def _make_mse_kernel(geom):
    block_rows = geom["block_rows"]
    blocks_per_split = geom["blocks_per_split"]
    n_blocks = geom["n_blocks"]
    tail_rows = geom["tail_rows"]
    lanes = geom["lanes"]

    def kernel(x_ref, t_ref, o_ref, acc_ref):
        i = pl.program_id(1)

        @pl.when(i == 0)
        def _():
            acc_ref[...] = jnp.zeros_like(acc_ref)

        d = x_ref[...].astype(jnp.float32) - t_ref[...].astype(jnp.float32)
        dd = d * d

        if tail_rows:  # static: only the globally-last block has invalid rows
            gblk = pl.program_id(0) * blocks_per_split + i
            row_ids = jax.lax.broadcasted_iota(jnp.int32, (block_rows, lanes), 0)
            keep = jnp.logical_or(gblk != (n_blocks - 1), row_ids < tail_rows)
            dd = jnp.where(keep, dd, 0.0)

        # Elementwise (VPU) accumulate; the cross-lane reduce runs only once below.
        acc_ref[...] += dd

        @pl.when(i == pl.num_programs(1) - 1)
        def _():
            o_ref[...] = jnp.full((8, lanes), jnp.sum(acc_ref[...]), dtype=jnp.float32)

    return kernel


def _mse_from_2d(x2, t2, n, geom):
    lanes = geom["lanes"]
    block_rows = geom["block_rows"]
    splits = geom["splits"]
    bps = geom["blocks_per_split"]

    out = pl.pallas_call(
        _make_mse_kernel(geom),
        out_shape=jax.ShapeDtypeStruct((splits * 8, lanes), jnp.float32),
        grid_spec=pltpu.PrefetchScalarGridSpec(
            num_scalar_prefetch=0,
            grid=(splits, bps),
            in_specs=[
                pl.BlockSpec((block_rows, lanes), lambda s, i: (s * bps + i, 0)),
                pl.BlockSpec((block_rows, lanes), lambda s, i: (s * bps + i, 0)),
            ],
            out_specs=pl.BlockSpec((8, lanes), lambda s, i: (s, 0)),
            scratch_shapes=[pltpu.VMEM((block_rows, lanes), jnp.float32)],
        ),
        compiler_params=pltpu.CompilerParams(
            dimension_semantics=("parallel", "arbitrary"),
        ),
    )(x2, t2)

    partials = out.reshape(splits, 8, lanes)[:, 0, 0]
    return jnp.sum(partials) / jnp.float32(n)


def mse_loss_pallas(x, target):
    """mean((x - target)^2) over all elements, computed in a Pallas kernel."""
    assert x.shape == target.shape, "input / target shape mismatch"
    n = int(x.size)
    geom = _geometry(n)
    return _mse_from_2d(_prepare_2d(x, n, geom), _prepare_2d(target, n, geom), n, geom)


class ContentLossPallas:
    """JAX/Pallas equivalent of the PyTorch ContentLoss module."""

    def __init__(self, target):
        # .detach() equivalent: treat the target as a constant
        self.target = jax.lax.stop_gradient(target)
        self._n = int(self.target.size)
        self._geom = _geometry(self._n)
        # Target is a constant: flatten/reshape it once, in its native dtype.
        self._t2d = _prepare_2d(self.target, self._n, self._geom)
        self.loss = None

    def __call__(self, x):
        assert x.shape == self.target.shape, "input / target shape mismatch"
        x2 = _prepare_2d(x, self._n, self._geom)
        # NOTE: under jit, self.loss holds a traced value (same stateful-attribute
        # semantics as the PyTorch module).
        self.loss = _mse_from_2d(x2, self._t2d, self._n, self._geom)
        return x  # forward is a pass-through, identical to the PyTorch module


if __name__ == "__main__":
    key = jax.random.PRNGKey(0)
    k_in, k_tgt = jax.random.split(key)

    # NCHW: batch=2, channels=4, spatial=16x16
    shape = (2, 4, 16, 16)
    x = jax.random.normal(k_in, shape, dtype=jnp.float32)
    target = jax.random.normal(k_tgt, shape, dtype=jnp.float32)

    module = ContentLossPallas(target)
    out = module(x)

    out = jax.block_until_ready(out)
    loss = jax.block_until_ready(module.loss)

    ref = jnp.mean((x - target) ** 2)
    assert jnp.allclose(loss, ref, rtol=1e-5, atol=1e-6), (loss, ref)
    assert out.shape == x.shape and bool(jnp.array_equal(out, x))

    # Extra sanity checks that exercise the multi-block, 2-way split, bf16 and
    # ragged-tail code paths (moderate sizes, still quick).
    checks = (
        (1, (4, 16, 64, 128), jnp.bfloat16),  # rows=4096 -> 2 blocks, splits=2
        (2, (4, 16, 96, 96), jnp.float32),    # rows=4608 -> 3 blocks, ragged tail
    )
    for seed, shp, dt in checks:
        kx, kt = jax.random.split(jax.random.PRNGKey(seed))
        xx = jax.random.normal(kx, shp, dtype=dt)
        tt = jax.random.normal(kt, shp, dtype=dt)
        got = jax.block_until_ready(mse_loss_pallas(xx, tt))
        want = jnp.mean((xx.astype(jnp.float32) - tt.astype(jnp.float32)) ** 2)
        assert jnp.allclose(got, want, rtol=1e-4, atol=1e-6), (shp, got, want)

    print("KERNEL_OK")
</pallas_src>

<mosaic_0001>
module attributes {stable_mosaic.version = 11 : i64} {
  func.func @kernel(%arg0: i32, %arg1: i32, %arg2: memref<16x128xf32, #tpu.memory_space<vmem>>, %arg3: memref<16x128xf32, #tpu.memory_space<vmem>>, %arg4: memref<8x128xf32, #tpu.memory_space<vmem>>, %arg5: memref<16x128xf32, #tpu.memory_space<vmem>>) attributes {dimension_semantics = [#tpu.dimension_semantics<parallel>, #tpu.dimension_semantics<arbitrary>], iteration_bounds = array<i64: 1, 1>, scalar_prefetch = 0 : i64, scratch_operands = 1 : i64, tpu.core_type = #tpu.core_type<tc>, window_params = [{transform_indices = @transform_0, window_bounds = array<i64: 16, 128>}, {transform_indices = @transform_1, window_bounds = array<i64: 16, 128>}, {transform_indices = @transform_2, window_bounds = array<i64: 8, 128>}]} {
    %c0_i32 = arith.constant 0 : i32
    %0 = arith.cmpi eq, %arg1, %c0_i32 : i32
    %1 = arith.extui %0 : i1 to i32
    %c0_i32_0 = arith.constant 0 : i32
    %2 = arith.cmpi ne, %1, %c0_i32_0 : i32
    scf.if %2 {
      %cst = arith.constant 0.000000e+00 : f32
      %13 = vector.broadcast %cst : f32 to vector<16x128xf32>
      %c0_10 = arith.constant 0 : index
      %c0_11 = arith.constant 0 : index
      %14 = vector.load %arg5[%c0_10, %c0_11] : memref<16x128xf32, #tpu.memory_space<vmem>>, vector<16x128xf32>
      tpu.vector_store %arg5[%c0_10, %c0_11], %13 {strides = array<i32>} : memref<16x128xf32, #tpu.memory_space<vmem>>, vector<16x128xf32>,
    } else {
    }
    %c0 = arith.constant 0 : index
    %c0_1 = arith.constant 0 : index
    %3 = vector.load %arg2[%c0, %c0_1] : memref<16x128xf32, #tpu.memory_space<vmem>>, vector<16x128xf32>
    %c0_2 = arith.constant 0 : index
    %c0_3 = arith.constant 0 : index
    %4 = vector.load %arg3[%c0_2, %c0_3] : memref<16x128xf32, #tpu.memory_space<vmem>>, vector<16x128xf32>
    %5 = arith.subf %3, %4 : vector<16x128xf32>
    %6 = arith.mulf %5, %5 : vector<16x128xf32>
    %c0_4 = arith.constant 0 : index
    %c0_5 = arith.constant 0 : index
    %7 = vector.load %arg5[%c0_4, %c0_5] : memref<16x128xf32, #tpu.memory_space<vmem>>, vector<16x128xf32>
    %8 = arith.addf %7, %6 : vector<16x128xf32>
    %c0_6 = arith.constant 0 : index
    %c0_7 = arith.constant 0 : index
    %9 = vector.load %arg5[%c0_6, %c0_7] : memref<16x128xf32, #tpu.memory_space<vmem>>, vector<16x128xf32>
    tpu.vector_store %arg5[%c0_6, %c0_7], %8 {strides = array<i32>} : memref<16x128xf32, #tpu.memory_space<vmem>>, vector<16x128xf32>,
    %c0_i32_8 = arith.constant 0 : i32
    %10 = arith.cmpi eq, %arg1, %c0_i32_8 : i32
    %11 = arith.extui %10 : i1 to i32
    %c0_i32_9 = arith.constant 0 : i32
    %12 = arith.cmpi ne, %11, %c0_i32_9 : i32
    scf.if %12 {
      %c0_10 = arith.constant 0 : index
      %c0_11 = arith.constant 0 : index
      %13 = vector.load %arg5[%c0_10, %c0_11] : memref<16x128xf32, #tpu.memory_space<vmem>>, vector<16x128xf32>
      %14 = vector.shape_cast %13 : vector<16x128xf32> to vector<1x16x128xf32>
      %cst = arith.constant dense<0.000000e+00> : vector<1xf32>
      %15 = vector.multi_reduction <add>, %14, %cst [1, 2] : vector<1x16x128xf32> to vector<1xf32>
      %16 = vector.shape_cast %15 : vector<1xf32> to vector<1x1x1xf32>
      %17 = vector.extract %16[0, 0, 0] : f32 from vector<1x1x1xf32>
      %18 = vector.broadcast %17 : f32 to vector<8x128xf32>
      %c0_12 = arith.constant 0 : index
      %c0_13 = arith.constant 0 : index
      %19 = vector.load %arg4[%c0_12, %c0_13] : memref<8x128xf32, #tpu.memory_space<vmem>>, vector<8x128xf32>
      tpu.vector_store %arg4[%c0_12, %c0_13], %18 {strides = array<i32>} : memref<8x128xf32, #tpu.memory_space<vmem>>, vector<8x128xf32>,
    } else {
    }
    return
  }
  func.func @transform_0(%arg0: i32, %arg1: i32) -> (i32, i32) {
    %c1_i32 = arith.constant 1 : i32
    %0 = arith.muli %arg0, %c1_i32 : i32
    %1 = arith.addi %0, %arg1 : i32
    %c0_i32 = arith.constant 0 : i32
    %c0_i32_0 = arith.constant 0 : i32
    return %1, %c0_i32 : i32, i32
  }
  func.func @transform_1(%arg0: i32, %arg1: i32) -> (i32, i32) {
    %c1_i32 = arith.constant 1 : i32
    %0 = arith.muli %arg0, %c1_i32 : i32
    %1 = arith.addi %0, %arg1 : i32
    %c0_i32 = arith.constant 0 : i32
    %c0_i32_0 = arith.constant 0 : i32
    return %1, %c0_i32 : i32, i32
  }
  func.func @transform_2(%arg0: i32, %arg1: i32) -> (i32, i32) {
    %c0_i32 = arith.constant 0 : i32
    %c0_i32_0 = arith.constant 0 : i32
    return %arg0, %c0_i32 : i32, i32
  }
}

</mosaic_0001>

<bundles_post_ra>
// kernel: tpu_custom_call.1
= control target key start
LH: loop header
LB: loop body
LE: loop exit
PB: predicated region body
PF: predicated region fallthrough
CT: control target
= control target key end

     0   :  { %7 = vsyncpa [#allocation4], 0  ;;  %s207_s0 = inlined_call_operand.hbm [shape: f32[16,128], index: 0, kind: input, shape index: {}]   ;;  %s208_s1 = inlined_call_operand.hbm [shape: f32[16,128], index: 1, kind: input, shape index: {}]   ;;  %s209_s2 = inlined_call_operand.hbm [shape: f32[8,128], index: 2, kind: output, shape index: {}]  }
   0x1   :  { %8 = vsyncpa [#allocation7], 0 }
   0x2   :  { %9 = vsyncpa [#allocation5], 0  ;;  %s178_s9 = smov [#allocation3]  }
   0x3   :  { %s19_s10 = sshll.u32 %s178_s9, 4  ;;  %s20_s10 = int_to_ptr.vmem [resolvable:$true] %s19_s10 }
   0x4   :  { %s120_s11 = scalar_lea.vmem %s20_s10, 256  ;;  %p125_p1 = scmp.lt.s32.totalorder %s20_s10, %s20_s10 }
   0x5   :  { %p121_p0 = scmp.ne.s32.totalorder %s20_s10, %s120_s11  ;;  %p126_p2 = scmp.lt.s32.totalorder %s120_s11, %s120_s11 }
   0x7   :  { %p127_p3 = por %p126_p2, %p125_p1 }
   0x9   :  { %p128_p4 = pnand %p127_p3, %p121_p0 }
   0xb   :  { %131 = shalt.err (!%p128_p4)
}
   0xc   :  { %s179_s12 = smov 128   ;;  %s180_s13 = smov 8  }
   0xd   :  { %25 = dma.hbm_to_vmem [thread:$0]  %s207_s0, 256, %s20_s10, [#allocation4], %s179_s12, %s179_s12, %s180_s13  }
   0xe   :  { %s181_s16 = smov [#allocation6]  }
   0xf   :  { %s35_s17 = sshll.u32 %s181_s16, 4  ;;  %s36_s17 = int_to_ptr.vmem [resolvable:$true] %s35_s17 }
  0x10   :  { %s140_s18 = scalar_lea.vmem %s36_s17, 256  ;;  %p145_p6 = scmp.lt.s32.totalorder %s36_s17, %s36_s17 }
  0x11   :  { %p141_p5 = scmp.ne.s32.totalorder %s36_s17, %s140_s18  ;;  %p146_p7 = scmp.lt.s32.totalorder %s140_s18, %s140_s18 }
  0x13   :  { %p147_p8 = por %p146_p7, %p145_p6 }
  0x15   :  { %p148_p9 = pnand %p147_p8, %p141_p5 }
  0x17   :  { %151 = shalt.err (!%p148_p9)
}
  0x18   :  { %41 = dma.hbm_to_vmem [thread:$0]  %s208_s1, 256, %s36_s17, [#allocation7], %s179_s12, %s179_s12, %s180_s13  }
  0x19   :  { %172 = dma.done.wait [#allocation4], 256  }
  0x1a   :  { %173 = vsyncadd [#allocation4], 4294967040 }
  0x1b   :  { %174 = dma.done.wait [#allocation7], 256  }
  0x1c   :  { %175 = vsyncadd [#allocation7], 4294967040  ;;  %v58_v0 = vld [vmem:[#allocation3] sm:$0xff]  ;;  %v59_v1 = vld [vmem:[#allocation3 + $0x8] sm:$0xff]  ;;  %s182_s0 = smov [#allocation8]  }
  0x1d   :  { %v60_v2 = vld [vmem:[#allocation6] sm:$0xff]  ;;  %v61_v3 = vld [vmem:[#allocation6 + $0x8] sm:$0xff]  ;;  %s95_s1 = sshll.u32 %s182_s0, 4  ;;  %s96_s1 = int_to_ptr.vmem [resolvable:$true] %s95_s1 }
  0x1e   :  { %v62_v4 = vsub.f32 %v58_v0, %v60_v2  ;;  %v63_v5 = vsub.f32 %v59_v1, %v61_v3  ;;  %s152_s22 = scalar_lea.vmem %s96_s1, 128  ;;  %p157_p11 = scmp.lt.s32.totalorder %s96_s1, %s96_s1 }
  0x1f   :  { %p153_p10 = scmp.ne.s32.totalorder %s96_s1, %s152_s22  ;;  %p158_p12 = scmp.lt.s32.totalorder %s152_s22, %s152_s22 }
  0x20   :  { %v64_v6 = vmul.f32 %v62_v4, %v62_v4  ;;  %v65_v7 = vmul.f32 %v63_v5, %v63_v5 }
  0x21   :  { %p159_p13 = por %p158_p12, %p157_p11 }
  0x22   :  { %v77_v8 = vadd.f32 %v65_v7, %v64_v6 }
  0x23   :  { %p160_p0 = pnand %p159_p13, %p153_p10 }
  0x24   :  { %78 = vadd.xlane.f32.xlu0 %v77_v8 }
  0xad   :  { %v79_v9 = vpop.xlane.xlu0 %78 }
  0xae   :  { %v80_v10 = vrot.slane %v79_v9, 4 }
  0xb0   :  { %v81_v11 = vadd.f32 %v80_v10, %v79_v9 }
  0xb2   :  { %v82_v12 = vrot.slane %v81_v11, 2 }
  0xb4   :  { %v83_v13 = vadd.f32 %v82_v12, %v81_v11 }
  0xb6   :  { %v84_v14 = vrot.slane %v83_v13, 1 }
  0xb8   :  { %v85_v15 = vadd.f32 %v84_v14, %v83_v13 }
  0xba   :  { %105 = vpush %v85_v15 }
  0xeb   :  { %s106_s21 = spop %105 }
  0xec   :  { %v87_v16 = vstv %s106_s21 }
  0xed   :  { %88 = vst [vmem:[#allocation8] sm:$0xff] %v87_v16 }
  0xee   :  { %163 = shalt.err (!%p160_p0)
}
  0xef   :  { %98 = dma.vmem_to_hbm [thread:$0]  %s96_s1, 128, %s209_s2, [#allocation5]  }
  0xf0   :  { %176 = dma.done.wait [#allocation5], 128  }
  0xf1   :  { %177 = vsyncadd [#allocation5], 4294967168 }
  0xf2   :  { %102 = vsyncpa [#allocation4], 1 }
  0xf3   :  { %103 = vsyncpa [#allocation7], 1 }
  0xf4   :  { %104 = vsyncpa [#allocation5], 1 }

</bundles_post_ra>
